<compile_context>
chip_gen: v5e
topology: v5e:2x2
jax: 0.10.0
libtpu: 0.0.40
codegen_flags: <defaults>
</compile_context>

<pallas_src>
import jax
import jax.numpy as jnp
from jax.experimental import pallas as pl
from jax.experimental.pallas import tpu as pltpu

INPUT_SIZE = 1024
HIDDEN = 20
NUM_GATES = 4          # PyTorch gate order: i, f, g, o


def lstm_cell_kernel(x_ref, h0_ref, c0_ref, w_ih_ref, w_hh_ref, b_ref,
                     h_out_ref, c_out_ref):
    """One LSTM cell step, fully fused in VMEM.

    x_ref    : (1, 1024)    f32   input row (cast to bf16 in-kernel for the MXU)
    h0_ref   : (1, 1, 20)   f32   previous hidden state
    c0_ref   : (1, 1, 20)   f32   previous cell state
    w_ih_ref : (1024, 80)   bf16  W_ih^T, gates concatenated on lanes [i|f|g|o]
    w_hh_ref : (20, 80)     f32   W_hh^T, same gate order
    b_ref    : (1, 80)      f32   b_ih + b_hh
    h_out_ref: (1, 1, 20)   f32   new hidden state == nn.LSTM `out` (seq_len=1)
    c_out_ref: (1, 1, 20)   f32   new cell state
    """
    # Big K=1024 contraction in bf16 (MXU-native), f32 accumulation.
    x_bf = x_ref[...].astype(jnp.bfloat16)                          # (1, 1024)
    gates = jnp.dot(x_bf, w_ih_ref[...],
                    preferred_element_type=jnp.float32)             # (1, 80)
    # Tiny K=20 hidden contribution, kept in f32 (no extra quantization).
    gates = gates + jnp.dot(h0_ref[0], w_hh_ref[...],
                            preferred_element_type=jnp.float32)
    gates = gates + b_ref[...]                                      # (1, 80) f32

    # Two whole-row transcendentals + one lane-index select (g-gate uses tanh),
    # instead of four non-lane-aligned slices each with its own activation.
    lane = jax.lax.broadcasted_iota(jnp.int32, gates.shape, 1)
    is_g = jnp.logical_and(lane >= 2 * HIDDEN, lane < 3 * HIDDEN)
    act = jnp.where(is_g, jnp.tanh(gates), jax.nn.sigmoid(gates))   # (1, 80)

    i_g = act[:, 0 * HIDDEN:1 * HIDDEN]
    f_g = act[:, 1 * HIDDEN:2 * HIDDEN]
    g_g = act[:, 2 * HIDDEN:3 * HIDDEN]
    o_g = act[:, 3 * HIDDEN:4 * HIDDEN]

    c_new = f_g * c0_ref[0] + i_g * g_g                             # (1, 20) f32
    h_new = o_g * jnp.tanh(c_new)

    h_out_ref[...] = h_new.reshape(h_out_ref.shape)
    c_out_ref[...] = c_new.reshape(c_out_ref.shape)


def pack_lstm_params(w_ih, w_hh, b_ih, b_hh):
    """ONE-TIME repack at parameter-load time (NOT in the per-call path).

    w_ih : (80, 1024), w_hh : (80, 20), b_ih/b_hh : (80,)   (PyTorch layout)
    returns:
      w_ih_t : (1024, 80) bf16  — W_ih^T, gates on lanes (i|f|g|o)
      w_hh_t : (20, 80)   f32   — W_hh^T
      bias   : (1, 80)    f32   — b_ih + b_hh
    """
    w_ih_t = w_ih.T.astype(jnp.bfloat16)                     # (1024, 80)
    w_hh_t = w_hh.T.astype(jnp.float32)                      # (20, 80)
    bias = (b_ih + b_hh).reshape(1, NUM_GATES * HIDDEN).astype(jnp.float32)
    return w_ih_t, w_hh_t, bias


def lstm_forward(x_flat, w_ih_t, w_hh_t, bias, h0, c0):
    """Pallas-backed equivalent of LSTM.forward (seq_len=1, batch=1).

    x_flat : any array with 1024 elements (forward does X.view(1, 1, -1))
    h0, c0 : (1, 1, 20) f32
    returns: (1, 1, 20) f32 — `out` of nn.LSTM (== h_n for seq_len=1)
    """
    x = x_flat.reshape(1, INPUT_SIZE).astype(jnp.float32)

    vmem = pl.BlockSpec(memory_space=pltpu.MemorySpace.VMEM)
    h_new, c_new = pl.pallas_call(
        lstm_cell_kernel,
        out_shape=(jax.ShapeDtypeStruct((1, 1, HIDDEN), jnp.float32),
                   jax.ShapeDtypeStruct((1, 1, HIDDEN), jnp.float32)),
        in_specs=[vmem] * 6,
        out_specs=(vmem, vmem),
    )(x, h0, c0, w_ih_t, w_hh_t, bias)

    # Original forward returns only `out`; c_new is produced by the kernel for
    # callers that need the recurrence but is discarded here.
    del c_new
    return h_new


def lstm_reference(x_flat, w_ih, w_hh, b_ih, b_hh, h0, c0):
    """Pure-JAX reference with the SAME quantization as the kernel path
    (x and W_ih in bf16; hidden path and all elementwise math in f32).
    Note: this validates against bf16 matmul numerics, not PyTorch's full-f32
    LSTM — expected deviation from f32 PyTorch is ~1e-3."""
    q = lambda a: a.astype(jnp.bfloat16).astype(jnp.float32)
    x = q(x_flat.reshape(1, INPUT_SIZE))
    h = h0.reshape(1, HIDDEN).astype(jnp.float32)
    c = c0.reshape(1, HIDDEN).astype(jnp.float32)
    gates = (
        jnp.dot(x, q(w_ih).T, precision=jax.lax.Precision.HIGHEST)
        + jnp.dot(h, w_hh.T.astype(jnp.float32),
                  precision=jax.lax.Precision.HIGHEST)
        + (b_ih + b_hh)[None, :]
    )  # (1, 80)
    i_g = jax.nn.sigmoid(gates[:, 0 * HIDDEN:1 * HIDDEN])
    f_g = jax.nn.sigmoid(gates[:, 1 * HIDDEN:2 * HIDDEN])
    g_g = jnp.tanh(gates[:, 2 * HIDDEN:3 * HIDDEN])
    o_g = jax.nn.sigmoid(gates[:, 3 * HIDDEN:4 * HIDDEN])
    c_new = f_g * c + i_g * g_g
    h_new = o_g * jnp.tanh(c_new)
    return h_new.reshape(1, 1, HIDDEN)


if __name__ == "__main__":
    key = jax.random.PRNGKey(0)
    k_x, k_wih, k_whh, k_bih, k_bhh, k_h, k_c = jax.random.split(key, 7)

    # Input: any tensor with 1024 elements (forward does X.view(1, 1, -1)).
    x = jax.random.normal(k_x, (32, 32), dtype=jnp.float32)
    x_flat = x.reshape(1, INPUT_SIZE)

    # Deterministic parameter init (PyTorch-style uniform(-k, k), k=1/sqrt(H)).
    bound = 1.0 / jnp.sqrt(jnp.float32(HIDDEN))
    w_ih = jax.random.uniform(
        k_wih, (NUM_GATES * HIDDEN, INPUT_SIZE), jnp.float32, -bound, bound)
    w_hh = jax.random.uniform(
        k_whh, (NUM_GATES * HIDDEN, HIDDEN), jnp.float32, -bound, bound)
    b_ih = jax.random.uniform(
        k_bih, (NUM_GATES * HIDDEN,), jnp.float32, -bound, bound)
    b_hh = jax.random.uniform(
        k_bhh, (NUM_GATES * HIDDEN,), jnp.float32, -bound, bound)

    # self.hidden = (randn(1,1,20), randn(1,1,20))
    h0 = jax.random.normal(k_h, (1, 1, HIDDEN), dtype=jnp.float32)
    c0 = jax.random.normal(k_c, (1, 1, HIDDEN), dtype=jnp.float32)

    # One-time weight repack (load-time, outside the per-call forward).
    w_ih_t, w_hh_t, bias = pack_lstm_params(w_ih, w_hh, b_ih, b_hh)
    w_ih_t = jax.block_until_ready(w_ih_t)
    w_hh_t = jax.block_until_ready(w_hh_t)
    bias = jax.block_until_ready(bias)

    fwd = jax.jit(lstm_forward)
    out = fwd(x_flat, w_ih_t, w_hh_t, bias, h0, c0)
    out = jax.block_until_ready(out)

    ref = lstm_reference(x_flat, w_ih, w_hh, b_ih, b_hh, h0, c0)
    assert out.shape == (1, 1, HIDDEN)
    assert jnp.allclose(out, ref, atol=1e-3, rtol=1e-3), (
        float(jnp.max(jnp.abs(out - ref))))

    print("KERNEL_OK")
</pallas_src>

<mosaic_0001>
module attributes {stable_mosaic.version = 11 : i64} {
  func.func @lstm_cell_kernel(%arg0: memref<1x1024xf32, #tpu.memory_space<vmem>>, %arg1: memref<1x1x20xf32, #tpu.memory_space<vmem>>, %arg2: memref<1x1x20xf32, #tpu.memory_space<vmem>>, %arg3: memref<1024x80xbf16, #tpu.memory_space<vmem>>, %arg4: memref<20x80xf32, #tpu.memory_space<vmem>>, %arg5: memref<1x80xf32, #tpu.memory_space<vmem>>, %arg6: memref<1x1x20xf32, #tpu.memory_space<vmem>>, %arg7: memref<1x1x20xf32, #tpu.memory_space<vmem>>) attributes {dimension_semantics = [], scalar_prefetch = 0 : i64, scratch_operands = 0 : i64, tpu.core_type = #tpu.core_type<tc>} {
    %c0 = arith.constant 0 : index
    %c0_0 = arith.constant 0 : index
    %0 = vector.load %arg0[%c0, %c0_0] : memref<1x1024xf32, #tpu.memory_space<vmem>>, vector<1x1024xf32>
    %1 = arith.truncf %0 : vector<1x1024xf32> to vector<1x1024xbf16>
    %c0_1 = arith.constant 0 : index
    %c0_2 = arith.constant 0 : index
    %2 = vector.load %arg3[%c0_1, %c0_2] : memref<1024x80xbf16, #tpu.memory_space<vmem>>, vector<1024x80xbf16>
    %cst = arith.constant dense<0.000000e+00> : vector<1x80xf32>
    %3 = tpu.matmul %1, %2, %cst {dimension_numbers = #tpu.dot_dimension_numbers<[1], [0], [0], [1], [0, 0, 1, 1], [], []>} : vector<1x1024xbf16>, vector<1024x80xbf16>, vector<1x80xf32> -> vector<1x80xf32>
    %c0_3 = arith.constant 0 : index
    %c0_4 = arith.constant 0 : index
    %c0_5 = arith.constant 0 : index
    %4 = vector.load %arg1[%c0_3, %c0_4, %c0_5] : memref<1x1x20xf32, #tpu.memory_space<vmem>>, vector<1x1x20xf32>
    %5 = vector.shape_cast %4 : vector<1x1x20xf32> to vector<1x20xf32>
    %c0_6 = arith.constant 0 : index
    %c0_7 = arith.constant 0 : index
    %6 = vector.load %arg4[%c0_6, %c0_7] : memref<20x80xf32, #tpu.memory_space<vmem>>, vector<20x80xf32>
    %cst_8 = arith.constant dense<0.000000e+00> : vector<1x80xf32>
    %7 = tpu.matmul %5, %6, %cst_8 {dimension_numbers = #tpu.dot_dimension_numbers<[1], [0], [0], [1], [0, 0, 1, 1], [], []>} : vector<1x20xf32>, vector<20x80xf32>, vector<1x80xf32> -> vector<1x80xf32>
    %8 = arith.addf %3, %7 : vector<1x80xf32>
    %c0_9 = arith.constant 0 : index
    %c0_10 = arith.constant 0 : index
    %9 = vector.load %arg5[%c0_9, %c0_10] : memref<1x80xf32, #tpu.memory_space<vmem>>, vector<1x80xf32>
    %10 = arith.addf %8, %9 : vector<1x80xf32>
    %11 = tpu.iota {dimensions = array<i32: 1>} : vector<1x80xi32>
    %c40_i32 = arith.constant 40 : i32
    %12 = vector.broadcast %c40_i32 : i32 to vector<1x80xi32>
    %13 = arith.cmpi sge, %11, %12 : vector<1x80xi32>
    %c60_i32 = arith.constant 60 : i32
    %14 = vector.broadcast %c60_i32 : i32 to vector<1x80xi32>
    %15 = arith.cmpi slt, %11, %14 : vector<1x80xi32>
    %16 = arith.andi %13, %15 : vector<1x80xi1>
    %17 = math.tanh %10 : vector<1x80xf32>
    %18 = arith.negf %10 : vector<1x80xf32>
    %19 = math.exp %18 : vector<1x80xf32>
    %cst_11 = arith.constant 1.000000e+00 : f32
    %20 = vector.broadcast %cst_11 : f32 to vector<1x80xf32>
    %21 = arith.addf %20, %19 : vector<1x80xf32>
    %22 = arith.divf %20, %21 : vector<1x80xf32>
    %23 = arith.select %16, %17, %22 : vector<1x80xi1>, vector<1x80xf32>
    %24 = vector.extract_strided_slice %23 {offsets = [0, 0], sizes = [1, 20], strides = [1, 1]} : vector<1x80xf32> to vector<1x20xf32>
    %25 = vector.extract_strided_slice %23 {offsets = [0, 20], sizes = [1, 20], strides = [1, 1]} : vector<1x80xf32> to vector<1x20xf32>
    %26 = vector.extract_strided_slice %23 {offsets = [0, 40], sizes = [1, 20], strides = [1, 1]} : vector<1x80xf32> to vector<1x20xf32>
    %27 = vector.extract_strided_slice %23 {offsets = [0, 60], sizes = [1, 20], strides = [1, 1]} : vector<1x80xf32> to vector<1x20xf32>
    %c0_12 = arith.constant 0 : index
    %c0_13 = arith.constant 0 : index
    %c0_14 = arith.constant 0 : index
    %28 = vector.load %arg2[%c0_12, %c0_13, %c0_14] : memref<1x1x20xf32, #tpu.memory_space<vmem>>, vector<1x1x20xf32>
    %29 = vector.shape_cast %28 : vector<1x1x20xf32> to vector<1x20xf32>
    %30 = arith.mulf %25, %29 : vector<1x20xf32>
    %31 = arith.mulf %24, %26 : vector<1x20xf32>
    %32 = arith.addf %30, %31 : vector<1x20xf32>
    %33 = math.tanh %32 : vector<1x20xf32>
    %34 = arith.mulf %27, %33 : vector<1x20xf32>
    %35 = vector.shape_cast %34 : vector<1x20xf32> to vector<1x1x20xf32>
    %c0_15 = arith.constant 0 : index
    %c0_16 = arith.constant 0 : index
    %c0_17 = arith.constant 0 : index
    %36 = vector.load %arg6[%c0_15, %c0_16, %c0_17] : memref<1x1x20xf32, #tpu.memory_space<vmem>>, vector<1x1x20xf32>
    tpu.vector_store %arg6[%c0_15, %c0_16, %c0_17], %35 {strides = array<i32>} : memref<1x1x20xf32, #tpu.memory_space<vmem>>, vector<1x1x20xf32>,
    %37 = vector.shape_cast %32 : vector<1x20xf32> to vector<1x1x20xf32>
    %c0_18 = arith.constant 0 : index
    %c0_19 = arith.constant 0 : index
    %c0_20 = arith.constant 0 : index
    %38 = vector.load %arg7[%c0_18, %c0_19, %c0_20] : memref<1x1x20xf32, #tpu.memory_space<vmem>>, vector<1x1x20xf32>
    tpu.vector_store %arg7[%c0_18, %c0_19, %c0_20], %37 {strides = array<i32>} : memref<1x1x20xf32, #tpu.memory_space<vmem>>, vector<1x1x20xf32>,
    return
  }
}

</mosaic_0001>

<bundles_post_ra>
// kernel: lstm_forward.1
= control target key start
LH: loop header
LB: loop body
LE: loop exit
PB: predicated region body
PF: predicated region fallthrough
CT: control target
= control target key end

     0   :  { %13 = vsyncpa [#allocation3], 0  ;;  %vm189_vm0 = vcmask 1043456   ;;  %vm185_vm1 = vcmask 162816   ;;  %s1462_s0 = inlined_call_operand.vmem [shape: f32[1,1024], index: 0, kind: input, shape index: {}]   ;;  %s1463_s1 = inlined_call_operand.vmem [shape: f32[1,1,20], index: 1, kind: input, shape index: {}]   ;;  %s1464_s2 = inlined_call_operand.vmem [shape: f32[1,1,20], index: 2, kind: input, shape index: {}]   ;;  %s1465_s3 = inlined_call_operand.vmem [shape: bf16[1024,80], index: 3, kind: input, shape index: {}]   ;;  %s1466_s4 = inlined_call_operand.vmem [shape: f32[20,80], index: 4, kind: input, shape index: {}]   ;;  %s1467_s5 = inlined_call_operand.vmem [shape: f32[1,80], index: 5, kind: input, shape index: {}]   ;;  %s1468_s6 = inlined_call_operand.hbm [shape: f32[1,1,20], index: 6, kind: output, shape index: {0}]   ;;  %s1469_s7 = inlined_call_operand.hbm [shape: f32[1,1,20], index: 7, kind: output, shape index: {1}]  }
   0x1   :  { %v184_v0 = vld [vmem:[%s1466_s4 + $0x10] sm:$0xf]  ;;  %v183_v1 = vld [vmem:[%s1466_s4 + $0x8] sm:$0xff]  ;;  %v1061_v2 = vld [vmem:[%s1465_s3 + $0x38] sm:$0xff] }
   0x2   :  { %795 = vmatpush.msk.msra.mxu0 %vm189_vm0, %v184_v0  ;;  %v1069_v3 = vld [vmem:[%s1465_s3 + $0x78] sm:$0xff]  ;;  %597 = vmatpush.bf16.msra.mxu1 %v1061_v2  ;;  %v182_v5 = vld [vmem:[%s1466_s4] sm:$0xff]  ;;  %v1060_v7 = vld [vmem:[%s1465_s3 + $0x30] sm:$0xff] }
   0x3   :  { %v1077_v4 = vld [vmem:[%s1465_s3 + $0xb8] sm:$0xff]  ;;  %610 = vmatpush.bf16.msra.mxu2 %v1069_v3  ;;  %v1068_v8 = vld [vmem:[%s1465_s3 + $0x70] sm:$0xff]  ;;  %v1059_v11 = vld [vmem:[%s1465_s3 + $0x28] sm:$0xff] }
   0x4   :  { %v1085_v6 = vld [vmem:[%s1465_s3 + $0xf8] sm:$0xff]  ;;  %207 = vmatpush.msra.mxu0 %v183_v1  ;;  %623 = vmatpush.bf16.msra.mxu3 %v1077_v4  ;;  %v1076_v9 = vld [vmem:[%s1465_s3 + $0xb0] sm:$0xff]  ;;  %v1067_v12 = vld [vmem:[%s1465_s3 + $0x68] sm:$0xff] }
   0x5   :  { %v1084_v10 = vld [vmem:[%s1465_s3 + $0xf0] sm:$0xff]  ;;  %v1075_v13 = vld [vmem:[%s1465_s3 + $0xa8] sm:$0xff]  ;;  %v1058_v15 = vld [vmem:[%s1465_s3 + $0x20] sm:$0xff] }
   0x6   :  { %208 = vmatpush.msra.mxu0 %v182_v5  ;;  %598 = vmatpush.bf16.msra.mxu1 %v1060_v7  ;;  %v1083_v14 = vld [vmem:[%s1465_s3 + $0xe8] sm:$0xff]  ;;  %v1066_v16 = vld [vmem:[%s1465_s3 + $0x60] sm:$0xff]  ;;  %v1057_v20 = vld [vmem:[%s1465_s3 + $0x18] sm:$0xff] }
   0x7   :  { %611 = vmatpush.bf16.msra.mxu2 %v1068_v8  ;;  %v1074_v17 = vld [vmem:[%s1465_s3 + $0xa0] sm:$0xff]  ;;  %v1065_v21 = vld [vmem:[%s1465_s3 + $0x58] sm:$0xff]  ;;  %v1056_v24 = vld [vmem:[%s1465_s3 + $0x10] sm:$0xff] }
   0x8   :  { %636 = vmatpush.bf16.msrb.mxu0 %v1085_v6  ;;  %624 = vmatpush.bf16.msra.mxu3 %v1076_v9  ;;  %v181_v18 = vld [vmem:[%s1463_s1] sm:$0x1]  ;;  %v1073_v22 = vld [vmem:[%s1465_s3 + $0x98] sm:$0xff]  ;;  %v1064_v25 = vld [vmem:[%s1465_s3 + $0x50] sm:$0xff] }
   0x9   :  { %796 = vmatmul.msk.f32.vlgmr.msra.gmra.mxu0 %vm185_vm1, %v181_v18  ;;  %v1082_v19 = vld [vmem:[%s1465_s3 + $0xe0] sm:$0xff]  ;;  %v1081_v23 = vld [vmem:[%s1465_s3 + $0xd8] sm:$0xff]  ;;  %v1072_v26 = vld [vmem:[%s1465_s3 + $0x90] sm:$0xff] }
   0xa   :  { %599 = vmatpush.bf16.msra.mxu1 %v1059_v11 }
   0xb   :  { %612 = vmatpush.bf16.msra.mxu2 %v1067_v12 }
   0xc   :  { %637 = vmatpush.bf16.msrb.mxu0 %v1084_v10  ;;  %625 = vmatpush.bf16.msra.mxu3 %v1075_v13 }
   0xe   :  { %600 = vmatpush.bf16.msra.mxu1 %v1058_v15 }
   0xf   :  { %613 = vmatpush.bf16.msra.mxu2 %v1066_v16 }
  0x10   :  { %638 = vmatpush.bf16.msrb.mxu0 %v1083_v14  ;;  %626 = vmatpush.bf16.msra.mxu3 %v1074_v17 }
  0x12   :  { %601 = vmatpush.bf16.msra.mxu1 %v1057_v20 }
  0x13   :  { %614 = vmatpush.bf16.msra.mxu2 %v1065_v21 }
  0x14   :  { %639 = vmatpush.bf16.msrb.mxu0 %v1082_v19  ;;  %627 = vmatpush.bf16.msra.mxu3 %v1073_v22 }
  0x15   :  { %14 = vsyncpa [#allocation5], 0  ;;  %v1080_v27 = vld [vmem:[%s1465_s3 + $0xd0] sm:$0xff]  ;;  %v1055_v28 = vld [vmem:[%s1465_s3 + $0x8] sm:$0xff]  ;;  %s1187_s15 = smov 20   ;;  %s1188_s16 = smov 40  }
  0x16   :  { %602 = vmatpush.bf16.msra.mxu1 %v1056_v24  ;;  %v1063_v29 = vld [vmem:[%s1465_s3 + $0x48] sm:$0xff]  ;;  %v1326_v30 = vld [vmem:[%s1462_s0] sm:$0xff]  ;;  %v1093_v37 = vld [vmem:[%s1465_s3 + $0x138] sm:$0xff]  ;;  %s1189_s17 = smov 68   ;;  %s1190_s18 = smov 108   ;;  %vm756_vm9 = vcmask 155648  }
  0x17   :  { %615 = vmatpush.bf16.msra.mxu2 %v1064_v25  ;;  %v1071_v31 = vld [vmem:[%s1465_s3 + $0x88] sm:$0xff]  ;;  %v29_v32 = vperm.slane %v1326_v30, 0  ;;  %v1054_v34 = vld [vmem:[%s1465_s3] sm:$0xff]  ;;  %v30_v35 = vperm.slane %v1326_v30, 1  ;;  %v1101_v39 = vld [vmem:[%s1465_s3 + $0x178] sm:$0xff]  ;;  %v31_v40 = vperm.slane %v1326_v30, 2 }
  0x18   :  { %640 = vmatpush.bf16.msrb.mxu0 %v1081_v23  ;;  %628 = vmatpush.bf16.msra.mxu3 %v1072_v26  ;;  %v1079_v33 = vld [vmem:[%s1465_s3 + $0xc8] sm:$0xff]  ;;  %v1062_v36 = vld [vmem:[%s1465_s3 + $0x40] sm:$0xff]  ;;  %v1109_v41 = vld [vmem:[%s1465_s3 + $0x1b8] sm:$0xff]  ;;  %v32_v43 = vperm.slane %v1326_v30, 3  ;;  %v33_v8 = vperm.slane %v1326_v30, 4  ;;  %v34_v11 = vperm.slane %v1326_v30, 5 }
  0x19   :  { %v1070_v38 = vld [vmem:[%s1465_s3 + $0x80] sm:$0xff]  ;;  %v45_v42 = vpack.c.bf16 %v29_v32, %v29_v32  ;;  %v46_v45 = vpack.c.bf16 %v30_v35, %v30_v35  ;;  %v1117_v46 = vld [vmem:[%s1465_s3 + $0x1f8] sm:$0xff]  ;;  %v1092_v47 = vld [vmem:[%s1465_s3 + $0x130] sm:$0xff]  ;;  %v47_v49 = vpack.c.bf16 %v31_v40, %v31_v40  ;;  %v35_v13 = vperm.slane %v1326_v30, 6  ;;  %s770_s4 = sshll.u32 %s1468_s6, 4  ;;  %s1192_s21 = smov [#allocation4]   ;;  %s771_s4 = int_to_ptr.hbm [resolvable:$true] %s770_s4 }
  0x1a   :  { %603 = vmatpush.bf16.msra.mxu1 %v1055_v28  ;;  %v1078_v44 = vld [vmem:[%s1465_s3 + $0xc0] sm:$0xff]  ;;  %v1100_v48 = vld [vmem:[%s1465_s3 + $0x170] sm:$0xff]  ;;  %v48_v51 = vpack.c.bf16 %v32_v43, %v32_v43  ;;  %v1091_v53 = vld [vmem:[%s1465_s3 + $0x128] sm:$0xff]  ;;  %v49_v15 = vpack.c.bf16 %v33_v8, %v33_v8  ;;  %v36_v16 = vperm.slane %v1326_v30, 7  ;;  %v50_v17 = vpack.c.bf16 %v34_v11, %v34_v11  ;;  %s779_s1 = sshll.u32 %s1192_s21, 4  ;;  %s781_s24 = sshll.u32 %s1469_s7, 4  ;;  %s780_s1 = int_to_ptr.vmem [resolvable:$true] %s779_s1  ;;  %s782_s24 = int_to_ptr.hbm [resolvable:$true] %s781_s24 }
  0x1b   :  { %616 = vmatpush.bf16.msra.mxu2 %v1063_v29  ;;  %v1108_v50 = vld [vmem:[%s1465_s3 + $0x1b0] sm:$0xff]  ;;  %v1099_v54 = vld [vmem:[%s1465_s3 + $0x168] sm:$0xff]  ;;  %v1090_v57 = vld [vmem:[%s1465_s3 + $0x120] sm:$0xff]  ;;  %v51_v19 = vpack.c.bf16 %v35_v13, %v35_v13 }
  0x1c   :  { %641 = vmatpush.bf16.msrb.mxu0 %v1080_v27  ;;  %629 = vmatpush.bf16.msra.mxu3 %v1071_v31  ;;  %v1116_v52 = vld [vmem:[%s1465_s3 + $0x1f0] sm:$0xff]  ;;  %v1107_v55 = vld [vmem:[%s1465_s3 + $0x1a8] sm:$0xff]  ;;  %v1098_v58 = vld [vmem:[%s1465_s3 + $0x160] sm:$0xff]  ;;  %v52_v20 = vpack.c.bf16 %v36_v16, %v36_v16 }
  0x1d   :  { %v1115_v56 = vld [vmem:[%s1465_s3 + $0x1e8] sm:$0xff]  ;;  %v1106_v59 = vld [vmem:[%s1465_s3 + $0x1a0] sm:$0xff]  ;;  %v1089_v61 = vld [vmem:[%s1465_s3 + $0x118] sm:$0xff] }
  0x1e   :  { %604 = vmatpush.bf16.msra.mxu1 %v1054_v34  ;;  %v1114_v60 = vld [vmem:[%s1465_s3 + $0x1e0] sm:$0xff]  ;;  %v1097_v62 = vld [vmem:[%s1465_s3 + $0x158] sm:$0xff]  ;;  %v1088_v1 = vld [vmem:[%s1465_s3 + $0x110] sm:$0xff] }
  0x1f   :  { %617 = vmatpush.bf16.msra.mxu2 %v1062_v36  ;;  %v1105_v63 = vld [vmem:[%s1465_s3 + $0x198] sm:$0xff]  ;;  %v1096_v2 = vld [vmem:[%s1465_s3 + $0x150] sm:$0xff]  ;;  %v1087_v5 = vld [vmem:[%s1465_s3 + $0x108] sm:$0xff] }
  0x20   :  { %642 = vmatpush.bf16.msrb.mxu0 %v1079_v33  ;;  %630 = vmatpush.bf16.msra.mxu3 %v1070_v38  ;;  %v1113_v0 = vld [vmem:[%s1465_s3 + $0x1d8] sm:$0xff]  ;;  %v1104_v3 = vld [vmem:[%s1465_s3 + $0x190] sm:$0xff]  ;;  %v1095_v6 = vld [vmem:[%s1465_s3 + $0x148] sm:$0xff] }
  0x21   :  { %605 = vmatmul.bf16.vlgmr.msra.gmra.mxu1 %v45_v42  ;;  %v1112_v4 = vld [vmem:[%s1465_s3 + $0x1d0] sm:$0xff]  ;;  %v1103_v7 = vld [vmem:[%s1465_s3 + $0x188] sm:$0xff]  ;;  %v1086_v10 = vld [vmem:[%s1465_s3 + $0x100] sm:$0xff] }
  0x22   :  { %649 = vmatpush.bf16.msrb.mxu1 %v1093_v37  ;;  %618 = vmatmul.bf16.vlgmr.msra.gmra.mxu2 %v46_v45  ;;  %v1111_v9 = vld [vmem:[%s1465_s3 + $0x1c8] sm:$0xff]  ;;  %v1094_v12 = vld [vmem:[%s1465_s3 + $0x140] sm:$0xff] }
  0x23   :  { %662 = vmatpush.bf16.msrb.mxu2 %v1101_v39  ;;  %631 = vmatmul.bf16.vlgmr.msra.gmra.mxu3 %v47_v49  ;;  %v1102_v14 = vld [vmem:[%s1465_s3 + $0x180] sm:$0xff] }
  0x24   :  { %675 = vmatpush.bf16.msrb.mxu3 %v1109_v41  ;;  %643 = vmatpush.bf16.msrb.mxu0 %v1078_v44  ;;  %v1110_v18 = vld [vmem:[%s1465_s3 + $0x1c0] sm:$0xff] }
  0x25   :  { %v701_v42 = vld [vmem:[%s1467_s5] sm:$0x1]  ;;  %s1186_s5 = smov 88  }
  0x26   :  { %650 = vmatpush.bf16.msrb.mxu1 %v1092_v47 }
  0x27   :  { %663 = vmatpush.bf16.msrb.mxu2 %v1100_v48  ;;  %644 = vmatmul.bf16.vlgmr.msrb.gmra.mxu0 %v48_v51  ;;  %v703_v51 = vlaneseq }
  0x28   :  { %688 = vmatpush.bf16.msra.mxu0 %v1117_v46  ;;  %676 = vmatpush.bf16.msrb.mxu3 %v1108_v50 }
  0x2a   :  { %651 = vmatpush.bf16.msrb.mxu1 %v1091_v53  ;;  %v704_v53 = vand.u32 127, %v703_v51 }
  0x2b   :  { %664 = vmatpush.bf16.msrb.mxu2 %v1099_v54 }
  0x2c   :  { %689 = vmatpush.bf16.msra.mxu0 %v1116_v52  ;;  %677 = vmatpush.bf16.msrb.mxu3 %v1107_v55  ;;  %vm705_vm2 = vcmp.ge.s32.totalorder %v704_v53, 40  ;;  %vm706_vm3 = vcmp.lt.s32.totalorder %v704_v53, 60 }
  0x2d   :  { %vm707_vm5 = vmand %vm705_vm2, %vm706_vm3 }
  0x2e   :  { %652 = vmatpush.bf16.msrb.mxu1 %v1090_v57 }
  0x2f   :  { %665 = vmatpush.bf16.msrb.mxu2 %v1098_v58 }
  0x30   :  { %690 = vmatpush.bf16.msra.mxu0 %v1115_v56  ;;  %678 = vmatpush.bf16.msrb.mxu3 %v1106_v59 }
  0x32   :  { %653 = vmatpush.bf16.msrb.mxu1 %v1089_v61 }
  0x33   :  { %666 = vmatpush.bf16.msrb.mxu2 %v1097_v62 }
  0x34   :  { %691 = vmatpush.bf16.msra.mxu0 %v1114_v60  ;;  %679 = vmatpush.bf16.msrb.mxu3 %v1105_v63 }
  0x36   :  { %654 = vmatpush.bf16.msrb.mxu1 %v1088_v1  ;;  %v1125_v1 = vld [vmem:[%s1464_s2] ss:$0 sm:$0xff]  ;;  %s1191_s2 = smov [#allocation2]  }
  0x37   :  { %667 = vmatpush.bf16.msrb.mxu2 %v1096_v2  ;;  %s768_s19 = sshll.u32 %s1191_s2, 4  ;;  %s769_s19 = int_to_ptr.vmem [resolvable:$true] %s768_s19 }
  0x38   :  { %692 = vmatpush.bf16.msra.mxu0 %v1113_v0  ;;  %680 = vmatpush.bf16.msrb.mxu3 %v1104_v3 }
  0x3a   :  { %655 = vmatpush.bf16.msrb.mxu1 %v1087_v5 }
  0x3b   :  { %668 = vmatpush.bf16.msrb.mxu2 %v1095_v6 }
  0x3c   :  { %693 = vmatpush.bf16.msra.mxu0 %v1112_v4  ;;  %681 = vmatpush.bf16.msrb.mxu3 %v1103_v7 }
  0x3e   :  { %656 = vmatpush.bf16.msrb.mxu1 %v1086_v10 }
  0x3f   :  { %669 = vmatpush.bf16.msrb.mxu2 %v1094_v12 }
  0x40   :  { %694 = vmatpush.bf16.msra.mxu0 %v1111_v9  ;;  %682 = vmatpush.bf16.msrb.mxu3 %v1102_v14 }
  0x41   :  { %657 = vmatmul.bf16.vlgmr.msrb.gmra.mxu1 %v49_v15 }
  0x42   :  { %670 = vmatmul.bf16.vlgmr.msrb.gmra.mxu2 %v50_v17 }
  0x43   :  { %683 = vmatmul.bf16.vlgmr.msrb.gmra.mxu3 %v51_v19 }
  0x44   :  { %695 = vmatpush.bf16.msra.mxu0 %v1110_v18 }
  0x47   :  { %696 = vmatmul.bf16.vlgmr.msra.gmra.mxu0 %v52_v20 }
  0x86   :  { %v210_v21 = vpop.f32.mrf.mxu0 }
  0x9e   :  { %v606_v22 = vpop.f32.mrf.mxu1 }
  0x9f   :  { %v607_v30 = vadd.f32 %v606_v22, %v210_v21 }
  0xa4   :  { %v645_v23 = vpop.f32.mrf.mxu0 }
  0xa5   :  { %v619_v24 = vpop.f32.mrf.mxu2 }
  0xa6   :  { %v608_v25 = vpop.f32.mrf.mxu1  ;;  %v632_v26 = vpop.f32.mrf.mxu3  ;;  %v620_v31 = vadd.f32 %v619_v24, %v607_v30 }
  0xa8   :  { %v633_v32 = vadd.f32 %v632_v26, %v620_v31 }
  0xaa   :  { %v646_v34 = vadd.f32 %v645_v23, %v633_v32 }
  0xac   :  { %v647_v27 = vpop.f32.mrf.mxu0 }
  0xad   :  { %v621_v28 = vpop.f32.mrf.mxu2 }
  0xae   :  { %v634_v29 = vpop.f32.mrf.mxu3 }
  0xbe   :  { %v658_v33 = vpop.f32.mrf.mxu1 }
  0xbf   :  { %v659_v36 = vadd.f32 %v658_v33, %v646_v34 }
  0xc4   :  { %v697_v35 = vpop.f32.mrf.mxu0 }
  0xc5   :  { %v671_v37 = vpop.f32.mrf.mxu2 }
  0xc6   :  { %v672_v38 = vadd.f32 %v671_v37, %v659_v36  ;;  %v684_v39 = vpop.f32.mrf.mxu3  ;;  %v660_v40 = vpop.f32.mrf.mxu1 }
  0xc8   :  { %v685_v41 = vadd.f32 %v684_v39, %v672_v38 }
  0xca   :  { %v698_v43 = vadd.f32 %v697_v35, %v685_v41 }
  0xcc   :  { %v699_v44 = vpop.f32.mrf.mxu0  ;;  %v702_v45 = vadd.f32 %v701_v42, %v698_v43 }
  0xcd   :  { %v673_v46 = vpop.f32.mrf.mxu2 }
  0xce   :  { %v1053_v47 = vmul.f32 -1.442695, %v702_v45  ;;  %v686_v48 = vpop.f32.mrf.mxu3 }
  0xd0   :  { %1126 = vpow2.f32 %v1053_v47 }
  0xd6   :  { %v1127_v49 = vpop.eup %1126 }
  0xd7   :  { %v712_v50 = vadd.f32 1.0, %v1127_v49 }
  0xd9   :  { %1128 = vrcp.f32 %v712_v50  ;;  %v724_v56 = vand.u32 2147483648, %v712_v50  ;;  %v722_v58 = vand.u32 2147483647, %v712_v50  ;;  %vm718_vm6 = vweird.f32 %v712_v50 }
  0xda   :  { %1130 = vtanh.f32 %v702_v45 }
  0xdb   :  { %v725_v60 = vor.u32 1.1754944e-38, %v724_v56  ;;  %vm723_vm8 = vcmp.eq.f32.partialorder %v722_v58, 8.507059e+37 }
  0xdf   :  { %v1129_v52 = vpop.eup %1128 }
  0xe0   :  { %v714_v54 = vmul.f32 %v1129_v52, %v712_v50  ;;  %vm719_vm4 = vweird.f32 %v1129_v52  ;;  %v1131_v62 = vpop.eup %1130 }
  0xe1   :  { %vm720_vm7 = vmor %vm718_vm6, %vm719_vm4 }
  0xe2   :  { %v715_v55 = vsub.f32 1.0, %v714_v54 }
  0xe4   :  { %v716_v57 = vmul.f32 %v1129_v52, %v715_v55 }
  0xe6   :  { %v717_v59 = vadd.f32 %v1129_v52, %v716_v57 }
  0xe8   :  { %v721_v61 = vsel %vm720_vm7, %v1129_v52, %v717_v59 }
  0xe9   :  { %v726_v63 = vsel %vm723_vm8, %v725_v60, %v721_v61 }
  0xea   :  { %v728_v0 = vsel %vm707_vm5, %v1131_v62, %v726_v63 }
  0xeb   :  { %737 = vrot.lane.b32.xlu0 %v728_v0, %s1186_s5 }
  0xf3   :  { %732 = vrot.lane.b32.xlu0 %v1125_v1, %s1187_s15 }
 0x15d   :  { %v738_v2 = vpop.permute.xlu0 %737 }
 0x15e   :  { %v740_v3 = vmul.f32 %v738_v2, %v728_v0 }
 0x160   :  { %742 = vrot.lane.b32.xlu1 %v740_v3, %s1187_s15 }
 0x165   :  { %v733_v4 = vpop.permute.xlu0 %732 }
 0x166   :  { %v735_v5 = vmul.f32 %v733_v4, %v728_v0 }
 0x1d2   :  { %v743_v6 = vpop.permute.xlu1 %742 }
 0x1d3   :  { %v745_v7 = vadd.f32 %v743_v6, %v735_v5 }
 0x1d5   :  { %1132 = vtanh.f32 %v745_v7 }
 0x1db   :  { %v1133_v8 = vpop.eup %1132 }
 0x1dc   :  { %748 = vrot.lane.b32.xlu1 %v1133_v8, %s1188_s16 }
 0x24e   :  { %v749_v9 = vpop.permute.xlu1 %748 }
 0x24f   :  { %v751_v10 = vmul.f32 %v749_v9, %v728_v0 }
 0x251   :  { %753 = vrot.lane.b32.xlu2 %v751_v10, %s1189_s17 }
 0x259   :  { %759 = vrot.lane.b32.xlu2 %v745_v7, %s1190_s18 }
 0x2ab   :  { %v754_v11 = vpop.permute.xlu2 %753 }
 0x2ac   :  { %757 = vst.msk [vmem:[#allocation2] sm:$0x1] %vm756_vm9, %v754_v11 }
 0x2ad   :  { %773 = dma.vmem_to_hbm [thread:$0]  %s769_s19, 16, %s771_s4, [#allocation3]  }
 0x2b3   :  { %v760_v12 = vpop.permute.xlu2 %759 }
 0x2b4   :  { %762 = vst.msk [vmem:[#allocation4] sm:$0x1] %vm756_vm9, %v760_v12 }
 0x2b5   :  { %784 = dma.vmem_to_hbm [thread:$0]  %s780_s1, 16, %s782_s24, [#allocation5]  }
 0x2b6   :  { %1182 = dma.done.wait [#allocation3], 16  }
 0x2b7   :  { %1183 = vsyncadd [#allocation3], 4294967280 }
 0x2b8   :  { %1184 = dma.done.wait [#allocation5], 16  }
 0x2b9   :  { %1185 = vsyncadd [#allocation5], 4294967280 }
 0x2ba   :  { %793 = vsyncpa [#allocation3], 1 }
 0x2bb   :  { %794 = vsyncpa [#allocation5], 1 }

</bundles_post_ra>
